<compile_context>
chip_gen: v5e
topology: v5e:2x2
jax: 0.10.0
libtpu: 0.0.40
codegen_flags: <defaults>
</compile_context>

<pallas_src>
import functools

import jax
import jax.numpy as jnp
from jax import lax
from jax.experimental import pallas as pl
from jax.experimental.pallas import tpu as pltpu


ROW_CHUNK = 128  # rows processed per inner step; keeps activations in vregs


def _mlp_kernel(x_ref, w1_ref, b1_ref, w2_ref, b2_ref, w3_ref, b3_ref, o_ref):
    # Load (small) weights once per grid step.
    w1 = w1_ref[...]          # (S, 128)  bf16
    w2 = w2_ref[...]          # (128,128) bf16
    b1 = b1_ref[...]          # (1, 128)  f32
    b2 = b2_ref[...]          # (1, 128)  f32
    w3 = w3_ref[...]          # (1, 128)  f32  (fc3 weight as a row)
    b3 = b3_ref[...]          # (1, 1)    f32

    n_chunks = x_ref.shape[0] // ROW_CHUNK  # static

    def body(c, carry):
        r = pl.multiple_of(c * ROW_CHUNK, ROW_CHUNK)
        # fc1 + ReLU  (bf16 operands, f32 accumulate on the MXU)
        x = x_ref[pl.ds(r, ROW_CHUNK), :].astype(jnp.bfloat16)
        h1 = jnp.dot(x, w1, preferred_element_type=jnp.float32) + b1
        h1 = jnp.maximum(h1, 0.0).astype(jnp.bfloat16)
        # fc2 + ReLU
        h2 = jnp.dot(h1, w2, preferred_element_type=jnp.float32) + b2
        h2 = jnp.maximum(h2, 0.0)
        # fc3 (128 -> 1): VPU multiply + XLU lane reduction instead of an N=1 MXU pass.
        v = jnp.sum(h2 * w3, axis=-1, keepdims=True) + b3
        o_ref[pl.ds(r, ROW_CHUNK), :] = v.astype(o_ref.dtype)
        return carry

    lax.fori_loop(0, n_chunks, body, 0, unroll=True)


def _round_up(n, m):
    return ((n + m - 1) // m) * m


@functools.partial(jax.jit, static_argnames=("batch_tile",))
def value_network_forward(x, params, *, batch_tile=512):
    """x: (B, state_dim) float32. Returns (B, 1) float32."""
    w1, b1, w2, b2, w3, b3 = params
    B, state_dim = x.shape
    hidden = w1.shape[1]

    # Tile is a multiple of ROW_CHUNK (hence of 8/128); pad the batch to a whole
    # number of tiles so the (8,128) BlockSpec constraint always holds.
    bt = _round_up(max(1, min(int(batch_tile), B)), ROW_CHUNK)
    b_pad = _round_up(B, bt)
    if b_pad != B:
        x = jnp.pad(x, ((0, b_pad - B), (0, 0)))
    grid = (b_pad // bt,)

    # Weight/bias packaging: bf16 MXU operands, f32 biases, fc3 weight as a (1, H) row.
    w1b = w1.astype(jnp.bfloat16)
    w2b = w2.astype(jnp.bfloat16)
    b1r = b1.reshape(1, hidden).astype(jnp.float32)
    b2r = b2.reshape(1, hidden).astype(jnp.float32)
    w3r = w3.reshape(1, hidden).astype(jnp.float32)
    b3r = b3.reshape(1, 1).astype(jnp.float32)

    flops = 2 * b_pad * (state_dim * hidden + hidden * hidden + hidden)
    bytes_accessed = (b_pad * state_dim * 4 + b_pad * 4
                      + w1b.size * 2 + w2b.size * 2
                      + (b1r.size + b2r.size + w3r.size + b3r.size) * 4)

    def full_block(a):
        return pl.BlockSpec(a.shape, lambda i: (0, 0))

    out = pl.pallas_call(
        _mlp_kernel,
        out_shape=jax.ShapeDtypeStruct((b_pad, 1), jnp.float32),
        grid_spec=pltpu.PrefetchScalarGridSpec(
            num_scalar_prefetch=0,
            grid=grid,
            in_specs=[
                pl.BlockSpec((bt, state_dim), lambda i: (i, 0)),   # x tile (pipelined)
                full_block(w1b), full_block(b1r),
                full_block(w2b), full_block(b2r),
                full_block(w3r), full_block(b3r),
            ],
            out_specs=pl.BlockSpec((bt, 1), lambda i: (i, 0)),
        ),
        compiler_params=pltpu.CompilerParams(
            dimension_semantics=("parallel",),   # megacore-shards the batch axis on v7x
            vmem_limit_bytes=32 * 1024 * 1024,   # safe on v5e/v6e/v7x; kernel uses far less
        ),
        cost_estimate=pl.CostEstimate(
            flops=int(flops), transcendentals=0, bytes_accessed=int(bytes_accessed)),
    )(x, w1b, b1r, w2b, b2r, w3r, b3r)

    return out[:B]


def init_params(key, state_dim, hidden=128):
    """Deterministic init mirroring nn.Linear default (uniform(-1/sqrt(fan_in), 1/sqrt(fan_in)))."""
    ks = jax.random.split(key, 6)

    def lin(kw, kb, fan_in, fan_out):
        bound = 1.0 / jnp.sqrt(fan_in)
        w = jax.random.uniform(kw, (fan_in, fan_out), jnp.float32, -bound, bound)
        b = jax.random.uniform(kb, (1, fan_out), jnp.float32, -bound, bound)
        return w, b

    w1, b1 = lin(ks[0], ks[1], state_dim, hidden)
    w2, b2 = lin(ks[2], ks[3], hidden, hidden)
    w3, b3 = lin(ks[4], ks[5], hidden, 1)
    return (w1, b1, w2, b2, w3, b3)


def _reference(x, params):
    w1, b1, w2, b2, w3, b3 = params
    h1 = jax.nn.relu(x @ w1 + b1)
    h2 = jax.nn.relu(h1 @ w2 + b2)
    return h2 @ w3 + b3


if __name__ == "__main__":
    key = jax.random.PRNGKey(0)
    k_x, k_p = jax.random.split(key)

    # Small but non-trivial: non-multiple batch exercises the padding path, and
    # batch_tile=128 gives a 2-step grid so the pipeline/tiling path is exercised.
    batch, state_dim = 200, 32
    x = jax.random.normal(k_x, (batch, state_dim), dtype=jnp.float32)
    params = init_params(k_p, state_dim)

    out = value_network_forward(x, params, batch_tile=128)
    out = jax.block_until_ready(out)

    ref = _reference(x, params)
    assert out.shape == (batch, 1), out.shape
    # bf16 MXU operands (f32 accumulation) => tolerance looser than pure-f32.
    max_err = jnp.max(jnp.abs(out - ref))
    assert jnp.allclose(out, ref, atol=3e-2, rtol=3e-2), max_err

    print("KERNEL_OK")
</pallas_src>

<mosaic_0001>
module attributes {stable_mosaic.version = 11 : i64} {
  func.func @_mlp_kernel(%arg0: i32, %arg1: memref<128x32xf32, #tpu.memory_space<vmem>>, %arg2: memref<32x128xbf16, #tpu.memory_space<vmem>>, %arg3: memref<1x128xf32, #tpu.memory_space<vmem>>, %arg4: memref<128x128xbf16, #tpu.memory_space<vmem>>, %arg5: memref<1x128xf32, #tpu.memory_space<vmem>>, %arg6: memref<1x128xf32, #tpu.memory_space<vmem>>, %arg7: memref<1x1xf32, #tpu.memory_space<vmem>>, %arg8: memref<128x1xf32, #tpu.memory_space<vmem>>) attributes {dimension_semantics = [#tpu.dimension_semantics<parallel>], iteration_bounds = array<i64: 2>, scalar_prefetch = 0 : i64, scratch_operands = 0 : i64, tpu.core_type = #tpu.core_type<tc>, window_params = [{transform_indices = @transform_0, window_bounds = array<i64: 128, 32>}, {pipeline_mode = #tpu.pipeline_mode<synchronous>, transform_indices = @transform_1, window_bounds = array<i64: 32, 128>}, {pipeline_mode = #tpu.pipeline_mode<synchronous>, transform_indices = @transform_2, window_bounds = array<i64: 1, 128>}, {pipeline_mode = #tpu.pipeline_mode<synchronous>, transform_indices = @transform_3, window_bounds = array<i64: 128, 128>}, {pipeline_mode = #tpu.pipeline_mode<synchronous>, transform_indices = @transform_4, window_bounds = array<i64: 1, 128>}, {pipeline_mode = #tpu.pipeline_mode<synchronous>, transform_indices = @transform_5, window_bounds = array<i64: 1, 128>}, {pipeline_mode = #tpu.pipeline_mode<synchronous>, transform_indices = @transform_6, window_bounds = array<i64: 1, 1>}, {transform_indices = @transform_7, window_bounds = array<i64: 128, 1>}]} {
    %c0 = arith.constant 0 : index
    %c0_0 = arith.constant 0 : index
    %0 = vector.load %arg2[%c0, %c0_0] : memref<32x128xbf16, #tpu.memory_space<vmem>>, vector<32x128xbf16>
    %c0_1 = arith.constant 0 : index
    %c0_2 = arith.constant 0 : index
    %1 = vector.load %arg4[%c0_1, %c0_2] : memref<128x128xbf16, #tpu.memory_space<vmem>>, vector<128x128xbf16>
    %c0_3 = arith.constant 0 : index
    %c0_4 = arith.constant 0 : index
    %2 = vector.load %arg3[%c0_3, %c0_4] : memref<1x128xf32, #tpu.memory_space<vmem>>, vector<1x128xf32>
    %c0_5 = arith.constant 0 : index
    %c0_6 = arith.constant 0 : index
    %3 = vector.load %arg5[%c0_5, %c0_6] : memref<1x128xf32, #tpu.memory_space<vmem>>, vector<1x128xf32>
    %c0_7 = arith.constant 0 : index
    %c0_8 = arith.constant 0 : index
    %4 = vector.load %arg6[%c0_7, %c0_8] : memref<1x128xf32, #tpu.memory_space<vmem>>, vector<1x128xf32>
    %c0_9 = arith.constant 0 : index
    %c0_10 = arith.constant 0 : index
    %5 = vector.load %arg7[%c0_9, %c0_10] : memref<1x1xf32, #tpu.memory_space<vmem>>, vector<1x1xf32>
    %c0_i32 = arith.constant 0 : i32
    %c128_i32 = arith.constant 128 : i32
    %6 = arith.muli %c0_i32, %c128_i32 : i32
    %7 = tpu.assume_multiple %6, 128 : i32
    %8 = arith.index_cast %7 : i32 to index
    %c0_11 = arith.constant 0 : index
    %9 = vector.load %arg1[%8, %c0_11] : memref<128x32xf32, #tpu.memory_space<vmem>>, vector<128x32xf32>
    %10 = arith.truncf %9 : vector<128x32xf32> to vector<128x32xbf16>
    %cst = arith.constant dense<0.000000e+00> : vector<128x128xf32>
    %11 = tpu.matmul %10, %0, %cst {dimension_numbers = #tpu.dot_dimension_numbers<[1], [0], [0], [1], [0, 0, 1, 1], [], []>} : vector<128x32xbf16>, vector<32x128xbf16>, vector<128x128xf32> -> vector<128x128xf32>
    %12 = vector.broadcast %2 : vector<1x128xf32> to vector<128x128xf32>
    %13 = arith.addf %11, %12 : vector<128x128xf32>
    %cst_12 = arith.constant 0.000000e+00 : f32
    %14 = vector.broadcast %cst_12 : f32 to vector<128x128xf32>
    %15 = arith.maximumf %13, %14 : vector<128x128xf32>
    %16 = arith.truncf %15 : vector<128x128xf32> to vector<128x128xbf16>
    %cst_13 = arith.constant dense<0.000000e+00> : vector<128x128xf32>
    %17 = tpu.matmul %16, %1, %cst_13 {dimension_numbers = #tpu.dot_dimension_numbers<[1], [0], [0], [1], [0, 0, 1, 1], [], []>} : vector<128x128xbf16>, vector<128x128xbf16>, vector<128x128xf32> -> vector<128x128xf32>
    %18 = vector.broadcast %3 : vector<1x128xf32> to vector<128x128xf32>
    %19 = arith.addf %17, %18 : vector<128x128xf32>
    %cst_14 = arith.constant 0.000000e+00 : f32
    %20 = vector.broadcast %cst_14 : f32 to vector<128x128xf32>
    %21 = arith.maximumf %19, %20 : vector<128x128xf32>
    %22 = vector.broadcast %4 : vector<1x128xf32> to vector<128x128xf32>
    %23 = arith.mulf %21, %22 : vector<128x128xf32>
    %cst_15 = arith.constant dense<0.000000e+00> : vector<128xf32>
    %24 = vector.multi_reduction <add>, %23, %cst_15 [1] : vector<128x128xf32> to vector<128xf32>
    %25 = vector.shape_cast %24 : vector<128xf32> to vector<128x1xf32>
    %26 = vector.broadcast %5 : vector<1x1xf32> to vector<128x1xf32>
    %27 = arith.addf %25, %26 : vector<128x1xf32>
    %28 = arith.index_cast %7 : i32 to index
    %c0_16 = arith.constant 0 : index
    %29 = vector.load %arg8[%28, %c0_16] : memref<128x1xf32, #tpu.memory_space<vmem>>, vector<128x1xf32>
    tpu.vector_store %arg8[%28, %c0_16], %27 {strides = array<i32>} : memref<128x1xf32, #tpu.memory_space<vmem>>, vector<128x1xf32>,
    %c1_i32 = arith.constant 1 : i32
    return
  }
  func.func @transform_0(%arg0: i32) -> (i32, i32) {
    %c0_i32 = arith.constant 0 : i32
    %c0_i32_0 = arith.constant 0 : i32
    return %arg0, %c0_i32 : i32, i32
  }
  func.func @transform_1(%arg0: i32) -> (i32, i32) {
    %c0_i32 = arith.constant 0 : i32
    %c0_i32_0 = arith.constant 0 : i32
    %c0_i32_1 = arith.constant 0 : i32
    return %c0_i32, %c0_i32_0 : i32, i32
  }
  func.func @transform_2(%arg0: i32) -> (i32, i32) {
    %c0_i32 = arith.constant 0 : i32
    %c0_i32_0 = arith.constant 0 : i32
    %c0_i32_1 = arith.constant 0 : i32
    return %c0_i32, %c0_i32_0 : i32, i32
  }
  func.func @transform_3(%arg0: i32) -> (i32, i32) {
    %c0_i32 = arith.constant 0 : i32
    %c0_i32_0 = arith.constant 0 : i32
    %c0_i32_1 = arith.constant 0 : i32
    return %c0_i32, %c0_i32_0 : i32, i32
  }
  func.func @transform_4(%arg0: i32) -> (i32, i32) {
    %c0_i32 = arith.constant 0 : i32
    %c0_i32_0 = arith.constant 0 : i32
    %c0_i32_1 = arith.constant 0 : i32
    return %c0_i32, %c0_i32_0 : i32, i32
  }
  func.func @transform_5(%arg0: i32) -> (i32, i32) {
    %c0_i32 = arith.constant 0 : i32
    %c0_i32_0 = arith.constant 0 : i32
    %c0_i32_1 = arith.constant 0 : i32
    return %c0_i32, %c0_i32_0 : i32, i32
  }
  func.func @transform_6(%arg0: i32) -> (i32, i32) {
    %c0_i32 = arith.constant 0 : i32
    %c0_i32_0 = arith.constant 0 : i32
    %c0_i32_1 = arith.constant 0 : i32
    return %c0_i32, %c0_i32_0 : i32, i32
  }
  func.func @transform_7(%arg0: i32) -> (i32, i32) {
    %c0_i32 = arith.constant 0 : i32
    %c0_i32_0 = arith.constant 0 : i32
    return %arg0, %c0_i32 : i32, i32
  }
}

</mosaic_0001>

<bundles_post_ra>
// kernel: value_network_forward.1
= control target key start
LH: loop header
LB: loop body
LE: loop exit
PB: predicated region body
PF: predicated region fallthrough
CT: control target
= control target key end

     0   :  { %s847_s26 = smov 0   ;;  %s1006_s0 = inlined_call_operand.vmem [shape: f32[256,32], index: 0, kind: input, shape index: {}]   ;;  %s1007_s1 = inlined_call_operand.vmem [shape: bf16[32,128], index: 1, kind: input, shape index: {}]   ;;  %s1008_s2 = inlined_call_operand.vmem [shape: f32[1,128], index: 2, kind: input, shape index: {}]   ;;  %s1009_s3 = inlined_call_operand.vmem [shape: bf16[128,128], index: 3, kind: input, shape index: {}]   ;;  %s1010_s4 = inlined_call_operand.vmem [shape: f32[1,128], index: 4, kind: input, shape index: {}]   ;;  %s1011_s5 = inlined_call_operand.vmem [shape: f32[1,128], index: 5, kind: input, shape index: {}]   ;;  %s1012_s6 = inlined_call_operand.<no memory space> [shape: f32[1,1], index: 6, kind: input, shape index: {}]   ;;  %s1013_s7 = inlined_call_operand.vmem [shape: f32[256,1], index: 7, kind: output, shape index: {}]  }
   0x1   :  { %v12_v0 = vstv %s1012_s6 }
   0x2   :  { %13 = vst [vmem:[#allocation2] sm:$0x1] %v12_v0 }
   0x3 LB: > { %s705_s27 = sadd.s32 4294967295, %s802_s26   ;;  %p709_p0 = scmp.ge.s32.totalorder %s802_s26, 1  ;;  %s802_s26 = sphi %s847_s26, %s19_s26  }
   0x4   : > { %p240_p1 = scmp.lt.s32.totalorder %s802_s26, 3 }
   0x6   : > { %p241_p2 = pnand %p709_p0, %p240_p1 }
   0x7   : > { %s710_s6 = sshll.u32 (!%p241_p2), %s705_s27, 4 }
   0x8   : > { %244 = sbr.rel (%p241_p2) target bundleno = 538 (0x21a), region = 48  ;;  %p273_p3 = scmp.lt.s32.totalorder (!%p241_p2), %s710_s6, 31 }
   0xd   : > { %v765_v1 = vld [vmem:[%s1007_s1 + $0x8] sm:$0xff]  ;;  %v764_v2 = vld [vmem:[%s1007_s1] sm:$0xff]  ;;  %s1015_s6 = smov (!%p273_p3, %s710_s6), 31  ;;  %vm348_vm0 = vcmask 261120   ;;  %v773_v15 = vld [vmem:[%s1009_s3 + $0x38] sm:$0xff]  ;;  %vm632_vm1 = vcmask 7168  }
   0xe   : > { %379 = vmatpush.bf16.msra.mxu0 %v765_v1  ;;  %774 = vmatpush.bf16.msra.mxu3 %v765_v1  ;;  %s711_s9 = sshll.u32 %s1015_s6, 3  ;;  %v772_v16 = vld [vmem:[%s1009_s3 + $0x30] sm:$0xff]  ;;  %v771_v17 = vld [vmem:[%s1009_s3 + $0x28] sm:$0xff]  ;;  %v770_v23 = vld [vmem:[%s1009_s3 + $0x20] sm:$0xff] }
   0xf   : > { %s869_s12 = scalar_lea.vmem %s1006_s0, %s711_s9  ;;  %497 = vmatpush.bf16.msra.mxu1 %v773_v15  ;;  %776 = vmatpush.bf16.msra.mxu2 %v773_v15  ;;  %v769_v31 = vld [vmem:[%s1009_s3 + $0x18] sm:$0xff]  ;;  %v768_v32 = vld [vmem:[%s1009_s3 + $0x10] sm:$0xff]  ;;  %v767_v33 = vld [vmem:[%s1009_s3 + $0x8] sm:$0xff]  ;;  %s966_s16 = scalar_lea.vmem %s1013_s7, %s711_s9 }
  0x10   : > { %v309_v3 = vld [vmem:[%s869_s12] sm:$0xff]  ;;  %v310_v4 = vld [vmem:[%s869_s12 + $0x8] sm:$0xff]  ;;  %v311_v6 = vld [vmem:[%s869_s12 + $0x10] sm:$0xff] }
  0x11   : > { %v325_v5 = vpack.c.bf16 %v310_v4, %v309_v3  ;;  %v312_v7 = vld [vmem:[%s869_s12 + $0x18] sm:$0xff]  ;;  %v313_v9 = vld [vmem:[%s869_s12 + $0x20] sm:$0xff]  ;;  %v314_v10 = vld [vmem:[%s869_s12 + $0x28] sm:$0xff] }
  0x12   : > { %380 = vmatpush.bf16.msra.mxu0 %v764_v2  ;;  %775 = vmatpush.bf16.msra.mxu3 %v764_v2  ;;  %v326_v8 = vpack.c.bf16 %v312_v7, %v311_v6  ;;  %v327_v11 = vpack.c.bf16 %v314_v10, %v313_v9  ;;  %v319_v12 = vld [vmem:[%s869_s12 + $0x50] sm:$0xff]  ;;  %v320_v13 = vld [vmem:[%s869_s12 + $0x58] sm:$0xff]  ;;  %v321_v20 = vld [vmem:[%s869_s12 + $0x60] sm:$0xff] }
  0x13   : > { %v330_v14 = vpack.c.bf16 %v320_v13, %v319_v12  ;;  %498 = vmatpush.bf16.msra.mxu1 %v772_v16  ;;  %777 = vmatpush.bf16.msra.mxu2 %v772_v16  ;;  %v315_v18 = vld [vmem:[%s869_s12 + $0x30] sm:$0xff]  ;;  %v316_v19 = vld [vmem:[%s869_s12 + $0x38] sm:$0xff]  ;;  %v322_v21 = vld [vmem:[%s869_s12 + $0x68] sm:$0xff] }
  0x14   : > { %v328_v22 = vpack.c.bf16 %v316_v19, %v315_v18  ;;  %v331_v24 = vpack.c.bf16 %v322_v21, %v321_v20  ;;  %v317_v25 = vld [vmem:[%s869_s12 + $0x40] sm:$0xff]  ;;  %v318_v26 = vld [vmem:[%s869_s12 + $0x48] sm:$0xff]  ;;  %v323_v27 = vld [vmem:[%s869_s12 + $0x70] sm:$0xff] }
  0x15   : > { %722 = vmatmul.msk.bf16.vlgmr.msra.gmra.mxu0 %vm348_vm0, %v325_v5  ;;  %727 = vmatmul.msk.bf16.vlgmr.msra.gmra.mxu3 %vm348_vm0, %v330_v14  ;;  %v324_v28 = vld [vmem:[%s869_s12 + $0x78] sm:$0xff]  ;;  %v329_v29 = vpack.c.bf16 %v318_v26, %v317_v25  ;;  %v766_v34 = vld [vmem:[%s1009_s3] sm:$0xff] }
  0x16   : > { %v332_v30 = vpack.c.bf16 %v324_v28, %v323_v27  ;;  %v792_v36 = vld [vmem:[%s1008_s2] ss:$0 sm:$0xff] }
  0x17   : > { %499 = vmatpush.bf16.msra.mxu1 %v771_v17  ;;  %778 = vmatpush.bf16.msra.mxu2 %v771_v17  ;;  %v925_v28 = vld [vmem:[%s1010_s4] ss:$0 sm:$0xff] }
  0x1b   : > { %500 = vmatpush.bf16.msra.mxu1 %v770_v23  ;;  %779 = vmatpush.bf16.msra.mxu2 %v770_v23 }
  0x1f   : > { %501 = vmatpush.bf16.msra.mxu1 %v769_v31  ;;  %780 = vmatpush.bf16.msra.mxu2 %v769_v31  ;;  %v931_v31 = vld [vmem:[%s1011_s5] ss:$0 sm:$0xff] }
  0x23   : > { %502 = vmatpush.bf16.msra.mxu1 %v768_v32  ;;  %781 = vmatpush.bf16.msra.mxu2 %v768_v32 }
  0x25   : > { %723 = vmatmul.msk.bf16.gmra.mxu0 %vm348_vm0, %v326_v8  ;;  %728 = vmatmul.msk.bf16.gmra.mxu3 %vm348_vm0, %v331_v24 }
  0x27   : > { %503 = vmatpush.bf16.msra.mxu1 %v767_v33  ;;  %782 = vmatpush.bf16.msra.mxu2 %v767_v33 }
  0x2b   : > { %504 = vmatpush.bf16.msra.mxu1 %v766_v34  ;;  %783 = vmatpush.bf16.msra.mxu2 %v766_v34 }
  0x35   : > { %724 = vmatmul.msk.bf16.gmra.mxu0 %vm348_vm0, %v327_v11  ;;  %729 = vmatmul.msk.bf16.gmra.mxu3 %vm348_vm0, %v332_v30 }
  0x45   : > { %725 = vmatmul.msk.bf16.gmra.mxu0 %vm348_vm0, %v328_v22 }
  0x55   : > { %726 = vmatmul.msk.bf16.gmra.mxu0 %vm348_vm0, %v329_v29 }
  0x92   : > { %v382_v35 = vpop.f32.mrf.mxu0 }
  0x93   : > { %v383_v37 = vadd.f32 %v792_v36, %v382_v35 }
  0x95   : > { %v422_v40 = vmax.f32 %v383_v37, 0.0 }
  0x98   : > { %v407_v1 = vpop.f32.mrf.mxu3 }
  0x99   : > { %v408_v10 = vadd.f32 %v792_v36, %v407_v1 }
  0x9a   : > { %v384_v38 = vpop.f32.mrf.mxu0 }
  0x9b   : > { %v385_v39 = vadd.f32 %v792_v36, %v384_v38  ;;  %v432_v12 = vmax.f32 %v408_v10, 0.0 }
  0x9d   : > { %v423_v41 = vmax.f32 %v385_v39, 0.0 }
  0x9f   : > { %v438_v42 = vpack.c.bf16 %v423_v41, %v422_v40 }
  0xa0   : > { %v409_v5 = vpop.f32.mrf.mxu3 }
  0xa1   : > { %505 = vmatmul.bf16.vlgmr.msra.gmra.mxu1 %v438_v42  ;;  %v410_v11 = vadd.f32 %v792_v36, %v409_v5 }
  0xa2   : > { %v387_v43 = vpop.f32.mrf.mxu0 }
  0xa3   : > { %v388_v44 = vadd.f32 %v792_v36, %v387_v43  ;;  %v433_v13 = vmax.f32 %v410_v11, 0.0 }
  0xa5   : > { %v424_v47 = vmax.f32 %v388_v44, 0.0  ;;  %v443_v14 = vpack.c.bf16 %v433_v13, %v432_v12 }
  0xa8   : > { %v412_v9 = vpop.f32.mrf.mxu3 }
  0xa9   : > { %v413_v16 = vadd.f32 %v792_v36, %v412_v9 }
  0xaa   : > { %v389_v45 = vpop.f32.mrf.mxu0 }
  0xab   : > { %v390_v46 = vadd.f32 %v792_v36, %v389_v45  ;;  %v434_v19 = vmax.f32 %v413_v16, 0.0 }
  0xad   : > { %v425_v48 = vmax.f32 %v390_v46, 0.0 }
  0xaf   : > { %v439_v49 = vpack.c.bf16 %v425_v48, %v424_v47 }
  0xb0   : > { %v414_v15 = vpop.f32.mrf.mxu3 }
  0xb1   : > { %510 = vmatmul.bf16.gmra.mxu1 %v439_v49  ;;  %v415_v17 = vadd.f32 %v792_v36, %v414_v15 }
  0xb2   : > { %v392_v50 = vpop.f32.mrf.mxu0 }
  0xb3   : > { %v393_v51 = vadd.f32 %v792_v36, %v392_v50  ;;  %v435_v20 = vmax.f32 %v415_v17, 0.0 }
  0xb5   : > { %v426_v54 = vmax.f32 %v393_v51, 0.0  ;;  %v444_v21 = vpack.c.bf16 %v435_v20, %v434_v19 }
  0xb8   : > { %v417_v18 = vpop.f32.mrf.mxu3 }
  0xb9   : > { %v418_v23 = vadd.f32 %v792_v36, %v417_v18 }
  0xba   : > { %v394_v52 = vpop.f32.mrf.mxu0 }
  0xbb   : > { %v395_v53 = vadd.f32 %v792_v36, %v394_v52  ;;  %v436_v25 = vmax.f32 %v418_v23, 0.0 }
  0xbd   : > { %v427_v55 = vmax.f32 %v395_v53, 0.0 }
  0xbf   : > { %v440_v56 = vpack.c.bf16 %v427_v55, %v426_v54 }
  0xc0   : > { %v419_v22 = vpop.f32.mrf.mxu3 }
  0xc1   : > { %515 = vmatmul.bf16.gmra.mxu1 %v440_v56  ;;  %v420_v24 = vadd.f32 %v792_v36, %v419_v22 }
  0xc2   : > { %v397_v57 = vpop.f32.mrf.mxu0 }
  0xc3   : > { %v398_v58 = vadd.f32 %v792_v36, %v397_v57  ;;  %v437_v26 = vmax.f32 %v420_v24, 0.0  ;;  %v795_v24 = vld [vmem:[#allocation2] ss:$0 sm:$0xff] }
  0xc5   : > { %v428_v61 = vmax.f32 %v398_v58, 0.0  ;;  %v445_v27 = vpack.c.bf16 %v437_v26, %v436_v25 }
  0xca   : > { %v399_v59 = vpop.f32.mrf.mxu0 }
  0xcb   : > { %v400_v60 = vadd.f32 %v792_v36, %v399_v59 }
  0xcd   : > { %v429_v62 = vmax.f32 %v400_v60, 0.0 }
  0xcf   : > { %v441_v63 = vpack.c.bf16 %v429_v62, %v428_v61 }
  0xd1   : > { %520 = vmatmul.bf16.gmra.mxu1 %v441_v63 }
  0xd2   : > { %v402_v0 = vpop.f32.mrf.mxu0 }
  0xd3   : > { %v403_v2 = vadd.f32 %v792_v36, %v402_v0 }
  0xd5   : > { %v430_v6 = vmax.f32 %v403_v2, 0.0 }
  0xda   : > { %v404_v3 = vpop.f32.mrf.mxu0 }
  0xdb   : > { %v405_v4 = vadd.f32 %v792_v36, %v404_v3 }
  0xdd   : > { %v431_v7 = vmax.f32 %v405_v4, 0.0 }
  0xdf   : > { %v442_v8 = vpack.c.bf16 %v431_v7, %v430_v6 }
  0xe1   : > { %525 = vmatmul.bf16.vlgmr.msra.gmra.mxu2 %v442_v8 }
  0xf1   : > { %530 = vmatmul.bf16.gmra.mxu2 %v443_v14 }
 0x101   : > { %535 = vmatmul.bf16.gmra.mxu2 %v444_v21 }
 0x111   : > { %540 = vmatmul.bf16.gmra.mxu2 %v445_v27 }
 0x11e   : > { %v506_v29 = vpop.f32.mrf.mxu1 }
 0x11f   : > { %v507_v30 = vadd.f32 %v925_v28, %v506_v29 }
 0x121   : > { %v546_v32 = vmax.f32 %v507_v30, 0.0 }
 0x123   : > { %v565_v33 = vmul.f32 %v931_v31, %v546_v32 }
 0x125   : > { %581 = vadd.xlane.f32.xlu0 %v565_v33 }
 0x126   : > { %v508_v34 = vpop.f32.mrf.mxu1 }
 0x127   : > { %v509_v35 = vadd.f32 %v925_v28, %v508_v34 }
 0x129   : > { %v547_v36 = vmax.f32 %v509_v35, 0.0 }
 0x12b   : > { %v566_v37 = vmul.f32 %v931_v31, %v547_v36 }
 0x12d   : > { %583 = vadd.xlane.f32.xlu0 %v566_v37 }
 0x12e   : > { %v511_v38 = vpop.f32.mrf.mxu1 }
 0x12f   : > { %v512_v39 = vadd.f32 %v925_v28, %v511_v38 }
 0x131   : > { %v548_v40 = vmax.f32 %v512_v39, 0.0 }
 0x133   : > { %v567_v41 = vmul.f32 %v931_v31, %v548_v40 }
 0x135   : > { %585 = vadd.xlane.f32.xlu1 %v567_v41 }
 0x136   : > { %v513_v42 = vpop.f32.mrf.mxu1 }
 0x137   : > { %v514_v43 = vadd.f32 %v925_v28, %v513_v42 }
 0x139   : > { %v549_v44 = vmax.f32 %v514_v43, 0.0 }
 0x13b   : > { %v568_v45 = vmul.f32 %v931_v31, %v549_v44 }
 0x13d   : > { %587 = vadd.xlane.f32.xlu1 %v568_v45 }
 0x13e   : > { %v516_v46 = vpop.f32.mrf.mxu1 }
 0x13f   : > { %v517_v47 = vadd.f32 %v925_v28, %v516_v46 }
 0x141   : > { %v550_v48 = vmax.f32 %v517_v47, 0.0 }
 0x143   : > { %v569_v49 = vmul.f32 %v931_v31, %v550_v48 }
 0x145   : > { %589 = vadd.xlane.f32.xlu2 %v569_v49 }
 0x146   : > { %v518_v50 = vpop.f32.mrf.mxu1 }
 0x147   : > { %v519_v51 = vadd.f32 %v925_v28, %v518_v50 }
 0x149   : > { %v551_v52 = vmax.f32 %v519_v51, 0.0 }
 0x14b   : > { %v570_v53 = vmul.f32 %v931_v31, %v551_v52 }
 0x14d   : > { %591 = vadd.xlane.f32.xlu2 %v570_v53 }
 0x14e   : > { %v521_v54 = vpop.f32.mrf.mxu1 }
 0x14f   : > { %v522_v55 = vadd.f32 %v925_v28, %v521_v54 }
 0x151   : > { %v552_v56 = vmax.f32 %v522_v55, 0.0 }
 0x153   : > { %v571_v57 = vmul.f32 %v931_v31, %v552_v56 }
 0x155   : > { %593 = vadd.xlane.f32.xlu0 %v571_v57 }
 0x156   : > { %v523_v58 = vpop.f32.mrf.mxu1 }
 0x157   : > { %v524_v59 = vadd.f32 %v925_v28, %v523_v58 }
 0x159   : > { %v553_v60 = vmax.f32 %v524_v59, 0.0 }
 0x15b   : > { %v572_v61 = vmul.f32 %v931_v31, %v553_v60 }
 0x15d   : > { %595 = vadd.xlane.f32.xlu1 %v572_v61 }
 0x164   : > { %v526_v62 = vpop.f32.mrf.mxu2 }
 0x165   : > { %v527_v63 = vadd.f32 %v925_v28, %v526_v62 }
 0x167   : > { %v554_v0 = vmax.f32 %v527_v63, 0.0 }
 0x169   : > { %v573_v1 = vmul.f32 %v931_v31, %v554_v0 }
 0x16b   : > { %597 = vadd.xlane.f32.xlu2 %v573_v1 }
 0x16c   : > { %v528_v2 = vpop.f32.mrf.mxu2 }
 0x16d   : > { %v529_v3 = vadd.f32 %v925_v28, %v528_v2 }
 0x16f   : > { %v555_v4 = vmax.f32 %v529_v3, 0.0 }
 0x171   : > { %v574_v5 = vmul.f32 %v931_v31, %v555_v4 }
 0x173   : > { %599 = vadd.xlane.f32.xlu0 %v574_v5 }
 0x174   : > { %v531_v6 = vpop.f32.mrf.mxu2 }
 0x175   : > { %v532_v7 = vadd.f32 %v925_v28, %v531_v6 }
 0x177   : > { %v556_v8 = vmax.f32 %v532_v7, 0.0 }
 0x179   : > { %v575_v9 = vmul.f32 %v931_v31, %v556_v8 }
 0x17b   : > { %601 = vadd.xlane.f32.xlu1 %v575_v9 }
 0x17c   : > { %v533_v10 = vpop.f32.mrf.mxu2 }
 0x17d   : > { %v534_v11 = vadd.f32 %v925_v28, %v533_v10 }
 0x17f   : > { %v557_v12 = vmax.f32 %v534_v11, 0.0 }
 0x181   : > { %v576_v13 = vmul.f32 %v931_v31, %v557_v12 }
 0x183   : > { %603 = vadd.xlane.f32.xlu2 %v576_v13 }
 0x184   : > { %v536_v14 = vpop.f32.mrf.mxu2 }
 0x185   : > { %v537_v15 = vadd.f32 %v925_v28, %v536_v14 }
 0x187   : > { %v558_v16 = vmax.f32 %v537_v15, 0.0 }
 0x189   : > { %v577_v17 = vmul.f32 %v931_v31, %v558_v16 }
 0x18b   : > { %605 = vadd.xlane.f32.xlu0 %v577_v17 }
 0x18c   : > { %v538_v18 = vpop.f32.mrf.mxu2 }
 0x18d   : > { %v539_v19 = vadd.f32 %v925_v28, %v538_v18 }
 0x18f   : > { %v559_v20 = vmax.f32 %v539_v19, 0.0 }
 0x191   : > { %v578_v21 = vmul.f32 %v931_v31, %v559_v20 }
 0x193   : > { %607 = vadd.xlane.f32.xlu1 %v578_v21 }
 0x194   : > { %v541_v22 = vpop.f32.mrf.mxu2 }
 0x195   : > { %v542_v23 = vadd.f32 %v925_v28, %v541_v22 }
 0x197   : > { %v560_v25 = vmax.f32 %v542_v23, 0.0 }
 0x198   : > { %v582_v26 = vpop.xlane.xlu0 %581 }
 0x199   : > { %v616_v27 = vadd.f32 %v795_v24, %v582_v26  ;;  %v579_v29 = vmul.f32 %v931_v31, %v560_v25 }
 0x19b   : > { %633 = vst.msk [vmem:[%s966_s16] sm:$0xff] %vm632_vm1, %v616_v27  ;;  %609 = vadd.xlane.f32.xlu2 %v579_v29 }
 0x19c   : > { %v543_v30 = vpop.f32.mrf.mxu2 }
 0x19d   : > { %v544_v32 = vadd.f32 %v925_v28, %v543_v30 }
 0x19f   : > { %v561_v33 = vmax.f32 %v544_v32, 0.0 }
 0x1a0   : > { %v584_v34 = vpop.xlane.xlu0 %583 }
 0x1a1   : > { %v617_v35 = vadd.f32 %v795_v24, %v584_v34  ;;  %v580_v36 = vmul.f32 %v931_v31, %v561_v33 }
 0x1a3   : > { %634 = vst.msk [vmem:[%s966_s16 + $0x8] sm:$0xff] %vm632_vm1, %v617_v35  ;;  %611 = vadd.xlane.f32.xlu0 %v580_v36 }
 0x1a8   : > { %v586_v37 = vpop.xlane.xlu1 %585 }
 0x1a9   : > { %v618_v38 = vadd.f32 %v795_v24, %v586_v37 }
 0x1ab   : > { %635 = vst.msk [vmem:[%s966_s16 + $0x10] sm:$0xff] %vm632_vm1, %v618_v38 }
 0x1b0   : > { %v588_v39 = vpop.xlane.xlu1 %587 }
 0x1b1   : > { %v619_v40 = vadd.f32 %v795_v24, %v588_v39 }
 0x1b3   : > { %636 = vst.msk [vmem:[%s966_s16 + $0x18] sm:$0xff] %vm632_vm1, %v619_v40 }
 0x1b8   : > { %v590_v28 = vpop.xlane.xlu2 %589 }
 0x1b9   : > { %v620_v41 = vadd.f32 %v795_v24, %v590_v28 }
 0x1bb   : > { %637 = vst.msk [vmem:[%s966_s16 + $0x20] sm:$0xff] %vm632_vm1, %v620_v41 }
 0x1c0   : > { %v592_v31 = vpop.xlane.xlu2 %591 }
 0x1c1   : > { %v621_v42 = vadd.f32 %v795_v24, %v592_v31 }
 0x1c3   : > { %638 = vst.msk [vmem:[%s966_s16 + $0x28] sm:$0xff] %vm632_vm1, %v621_v42 }
 0x1c8   : > { %v594_v43 = vpop.xlane.xlu0 %593 }
 0x1c9   : > { %v622_v44 = vadd.f32 %v795_v24, %v594_v43 }
 0x1cb   : > { %639 = vst.msk [vmem:[%s966_s16 + $0x30] sm:$0xff] %vm632_vm1, %v622_v44 }
 0x1d0   : > { %v596_v45 = vpop.xlane.xlu1 %595 }
 0x1d1   : > { %v623_v46 = vadd.f32 %v795_v24, %v596_v45 }
 0x1d3   : > { %640 = vst.msk [vmem:[%s966_s16 + $0x38] sm:$0xff] %vm632_vm1, %v623_v46 }
 0x1de   : > { %v598_v47 = vpop.xlane.xlu2 %597 }
 0x1df   : > { %v624_v48 = vadd.f32 %v795_v24, %v598_v47 }
 0x1e1   : > { %641 = vst.msk [vmem:[%s966_s16 + $0x40] sm:$0xff] %vm632_vm1, %v624_v48 }
 0x1e6   : > { %v600_v49 = vpop.xlane.xlu0 %599 }
 0x1e7   : > { %v625_v50 = vadd.f32 %v795_v24, %v600_v49 }
 0x1e9   : > { %642 = vst.msk [vmem:[%s966_s16 + $0x48] sm:$0xff] %vm632_vm1, %v625_v50 }
 0x1ee   : > { %v602_v51 = vpop.xlane.xlu1 %601 }
 0x1ef   : > { %v626_v52 = vadd.f32 %v795_v24, %v602_v51 }
 0x1f1   : > { %643 = vst.msk [vmem:[%s966_s16 + $0x50] sm:$0xff] %vm632_vm1, %v626_v52 }
 0x1f6   : > { %v604_v53 = vpop.xlane.xlu2 %603 }
 0x1f7   : > { %v627_v54 = vadd.f32 %v795_v24, %v604_v53 }
 0x1f9   : > { %644 = vst.msk [vmem:[%s966_s16 + $0x58] sm:$0xff] %vm632_vm1, %v627_v54 }
 0x1fe   : > { %v606_v55 = vpop.xlane.xlu0 %605 }
 0x1ff   : > { %v628_v56 = vadd.f32 %v795_v24, %v606_v55 }
 0x201   : > { %645 = vst.msk [vmem:[%s966_s16 + $0x60] sm:$0xff] %vm632_vm1, %v628_v56 }
 0x206   : > { %v608_v57 = vpop.xlane.xlu1 %607 }
 0x207   : > { %v629_v58 = vadd.f32 %v795_v24, %v608_v57 }
 0x209   : > { %646 = vst.msk [vmem:[%s966_s16 + $0x68] sm:$0xff] %vm632_vm1, %v629_v58 }
 0x20e   : > { %v610_v59 = vpop.xlane.xlu2 %609 }
 0x20f   : > { %v630_v60 = vadd.f32 %v795_v24, %v610_v59 }
 0x211   : > { %647 = vst.msk [vmem:[%s966_s16 + $0x70] sm:$0xff] %vm632_vm1, %v630_v60 }
 0x216   : > { %v612_v61 = vpop.xlane.xlu0 %611 }
 0x217   : > { %v631_v62 = vadd.f32 %v795_v24, %v612_v61 }
 0x219   : > { %648 = vst.msk [vmem:[%s966_s16 + $0x78] sm:$0xff] %vm632_vm1, %v631_v62 }
 0x21a PF: > { %s19_s26 = sadd.s32 1, %s802_s26  }
 0x21b   : > { %p16_p4 = scmp.ge.s32.totalorder %s19_s26, 4  }
 0x21d   :  { %18 = sbr.rel (!%p16_p4) target bundleno = 3 (0x3), region = 78 }

</bundles_post_ra>
